<compile_context>
chip_gen: v5e
topology: v5e:2x2
jax: 0.10.0
libtpu: 0.0.40
codegen_flags: <defaults>
</compile_context>

<pallas_src>
import jax
import jax.numpy as jnp
from jax.experimental import pallas as pl
from jax.experimental.pallas import tpu as pltpu


def _round_up(x, m):
    return ((x + m - 1) // m) * m


def _fused_mlp_kernel(x_ref, w1_ref, b1_ref, w2_ref, b2_ref, o_ref):
    """out = (relu(x @ w1 + b1)) @ w2 + b2 for one (tm, N2p) output row-tile."""
    # Layer 1: MXU matmul with f32 accumulation, fused bias + ReLU.
    h = jnp.dot(x_ref[...], w1_ref[...], preferred_element_type=jnp.float32)
    h = jnp.maximum(h + b1_ref[...], 0.0)
    # Layer 2: hidden activation stays on-chip; cast to weight dtype for the MXU.
    y = jnp.dot(h.astype(w2_ref.dtype), w2_ref[...],
                preferred_element_type=jnp.float32)
    o_ref[...] = (y + b2_ref[...]).astype(o_ref.dtype)


def mlp_forward(x, w1, b1, w2, b2, *, tm=256):
    """Fused MLP forward: relu(x @ w1 + b1) @ w2 + b2.

    x: (M, K1)  w1: (K1, H)  b1: (H,)  w2: (H, N2)  b2: (N2,)  ->  (M, N2)
    Weights/biases are small enough to keep fully resident in VMEM; only the
    batch dimension M is tiled (grid = (Mp // tm,), "parallel" for megacore).
    # TODO(synk): for production shapes where precision allows, cast x/w1/w2 to
    # bfloat16 at the call boundary (f32 accumulate is already in place).
    """
    M, K1 = x.shape
    K1b, H = w1.shape
    Hb, N2 = w2.shape
    assert K1 == K1b and H == Hb
    assert b1.shape == (H,) and b2.shape == (N2,)
    assert H % 128 == 0, "hidden width must be lane-aligned (256 is)"

    # Row tile: shrink for small batches while keeping 8-sublane alignment.
    tm = min(tm, _round_up(M, 8))
    Mp = _round_up(M, tm)
    # Pad only the output lanes (w2/b2 columns) to 128 for unmasked stores.
    N2p = _round_up(N2, 128)

    x_p = x if Mp == M else jnp.pad(x, ((0, Mp - M), (0, 0)))
    if N2p == N2:
        w2_p, b2_p = w2, b2
    else:
        w2_p = jnp.pad(w2, ((0, 0), (0, N2p - N2)))
        b2_p = jnp.pad(b2, (0, N2p - N2))
    b1_p = b1.reshape(1, H)
    b2_p = b2_p.reshape(1, N2p)

    grid = (Mp // tm,)

    cost = pl.CostEstimate(
        flops=2 * Mp * K1 * H + 2 * Mp * H * N2p,
        transcendentals=0,
        # x read once, weights/biases resident (read once), y written once.
        bytes_accessed=4 * (Mp * K1 + K1 * H + H + H * N2p + N2p + Mp * N2p),
    )

    out_p = pl.pallas_call(
        _fused_mlp_kernel,
        out_shape=jax.ShapeDtypeStruct((Mp, N2p), x.dtype),
        grid_spec=pltpu.PrefetchScalarGridSpec(
            num_scalar_prefetch=0,
            grid=grid,
            in_specs=[
                # x row tile; K dim equals full extent (20) -> no K padding.
                pl.BlockSpec((tm, K1), lambda i: (i, 0)),
                # w1, b1, w2, b2 fully VMEM-resident across all grid steps.
                pl.BlockSpec((K1, H), lambda i: (0, 0)),
                pl.BlockSpec((1, H), lambda i: (0, 0)),
                pl.BlockSpec((H, N2p), lambda i: (0, 0)),
                pl.BlockSpec((1, N2p), lambda i: (0, 0)),
            ],
            out_specs=pl.BlockSpec((tm, N2p), lambda i: (i, 0)),
        ),
        compiler_params=pltpu.CompilerParams(
            dimension_semantics=("parallel",),
        ),
        cost_estimate=cost,
    )(x_p, w1, b1_p, w2_p, b2_p)

    if Mp != M or N2p != N2:
        return out_p[:M, :N2]
    return out_p


if __name__ == "__main__":
    # Deterministic synthetic params / inputs (no checkpoint load).
    key = jax.random.PRNGKey(0)
    kx, kw1, kb1, kw2, kb2 = jax.random.split(key, 5)

    batch, in_units, hidden_units, out_units = 2, 20, 256, 10

    x = jax.random.uniform(kx, (batch, in_units), dtype=jnp.float32)
    # Stored as (in, out) -- equivalent to torch Linear's weight.T.
    w1 = jax.random.normal(kw1, (in_units, hidden_units), dtype=jnp.float32) * 0.1
    b1 = jax.random.normal(kb1, (hidden_units,), dtype=jnp.float32) * 0.1
    w2 = jax.random.normal(kw2, (hidden_units, out_units), dtype=jnp.float32) * 0.1
    b2 = jax.random.normal(kb2, (out_units,), dtype=jnp.float32) * 0.1

    out = mlp_forward(x, w1, b1, w2, b2)
    out = jax.block_until_ready(out)

    # Reference in plain JAX.
    ref = jnp.maximum(x @ w1 + b1, 0.0) @ w2 + b2
    assert out.shape == (batch, out_units)
    assert jnp.allclose(out, ref, atol=1e-4, rtol=1e-4), (
        f"max abs err {jnp.max(jnp.abs(out - ref))}"
    )

    print("KERNEL_OK")
</pallas_src>

<mosaic_0001>
module attributes {stable_mosaic.version = 11 : i64} {
  func.func @_fused_mlp_kernel(%arg0: i32, %arg1: memref<8x20xf32, #tpu.memory_space<vmem>>, %arg2: memref<20x256xf32, #tpu.memory_space<vmem>>, %arg3: memref<1x256xf32, #tpu.memory_space<vmem>>, %arg4: memref<256x128xf32, #tpu.memory_space<vmem>>, %arg5: memref<1x128xf32, #tpu.memory_space<vmem>>, %arg6: memref<8x128xf32, #tpu.memory_space<vmem>>) attributes {dimension_semantics = [#tpu.dimension_semantics<parallel>], iteration_bounds = array<i64: 1>, scalar_prefetch = 0 : i64, scratch_operands = 0 : i64, tpu.core_type = #tpu.core_type<tc>, window_params = [{transform_indices = @transform_0, window_bounds = array<i64: 8, 20>}, {pipeline_mode = #tpu.pipeline_mode<synchronous>, transform_indices = @transform_1, window_bounds = array<i64: 20, 256>}, {pipeline_mode = #tpu.pipeline_mode<synchronous>, transform_indices = @transform_2, window_bounds = array<i64: 1, 256>}, {pipeline_mode = #tpu.pipeline_mode<synchronous>, transform_indices = @transform_3, window_bounds = array<i64: 256, 128>}, {pipeline_mode = #tpu.pipeline_mode<synchronous>, transform_indices = @transform_4, window_bounds = array<i64: 1, 128>}, {transform_indices = @transform_5, window_bounds = array<i64: 8, 128>}]} {
    %c0 = arith.constant 0 : index
    %c0_0 = arith.constant 0 : index
    %0 = vector.load %arg1[%c0, %c0_0] : memref<8x20xf32, #tpu.memory_space<vmem>>, vector<8x20xf32>
    %c0_1 = arith.constant 0 : index
    %c0_2 = arith.constant 0 : index
    %1 = vector.load %arg2[%c0_1, %c0_2] : memref<20x256xf32, #tpu.memory_space<vmem>>, vector<20x256xf32>
    %cst = arith.constant dense<0.000000e+00> : vector<8x256xf32>
    %2 = tpu.matmul %0, %1, %cst {dimension_numbers = #tpu.dot_dimension_numbers<[1], [0], [0], [1], [0, 0, 1, 1], [], []>} : vector<8x20xf32>, vector<20x256xf32>, vector<8x256xf32> -> vector<8x256xf32>
    %c0_3 = arith.constant 0 : index
    %c0_4 = arith.constant 0 : index
    %3 = vector.load %arg3[%c0_3, %c0_4] : memref<1x256xf32, #tpu.memory_space<vmem>>, vector<1x256xf32>
    %4 = vector.broadcast %3 : vector<1x256xf32> to vector<8x256xf32>
    %5 = arith.addf %2, %4 : vector<8x256xf32>
    %cst_5 = arith.constant 0.000000e+00 : f32
    %6 = vector.broadcast %cst_5 : f32 to vector<8x256xf32>
    %7 = arith.maximumf %5, %6 : vector<8x256xf32>
    %c0_6 = arith.constant 0 : index
    %c0_7 = arith.constant 0 : index
    %8 = vector.load %arg4[%c0_6, %c0_7] : memref<256x128xf32, #tpu.memory_space<vmem>>, vector<256x128xf32>
    %cst_8 = arith.constant dense<0.000000e+00> : vector<8x128xf32>
    %9 = tpu.matmul %7, %8, %cst_8 {dimension_numbers = #tpu.dot_dimension_numbers<[1], [0], [0], [1], [0, 0, 1, 1], [], []>} : vector<8x256xf32>, vector<256x128xf32>, vector<8x128xf32> -> vector<8x128xf32>
    %c0_9 = arith.constant 0 : index
    %c0_10 = arith.constant 0 : index
    %10 = vector.load %arg5[%c0_9, %c0_10] : memref<1x128xf32, #tpu.memory_space<vmem>>, vector<1x128xf32>
    %11 = vector.broadcast %10 : vector<1x128xf32> to vector<8x128xf32>
    %12 = arith.addf %9, %11 : vector<8x128xf32>
    %c0_11 = arith.constant 0 : index
    %c0_12 = arith.constant 0 : index
    %13 = vector.load %arg6[%c0_11, %c0_12] : memref<8x128xf32, #tpu.memory_space<vmem>>, vector<8x128xf32>
    tpu.vector_store %arg6[%c0_11, %c0_12], %12 {strides = array<i32>} : memref<8x128xf32, #tpu.memory_space<vmem>>, vector<8x128xf32>,
    return
  }
  func.func @transform_0(%arg0: i32) -> (i32, i32) {
    %c0_i32 = arith.constant 0 : i32
    %c0_i32_0 = arith.constant 0 : i32
    return %arg0, %c0_i32 : i32, i32
  }
  func.func @transform_1(%arg0: i32) -> (i32, i32) {
    %c0_i32 = arith.constant 0 : i32
    %c0_i32_0 = arith.constant 0 : i32
    %c0_i32_1 = arith.constant 0 : i32
    return %c0_i32, %c0_i32_0 : i32, i32
  }
  func.func @transform_2(%arg0: i32) -> (i32, i32) {
    %c0_i32 = arith.constant 0 : i32
    %c0_i32_0 = arith.constant 0 : i32
    %c0_i32_1 = arith.constant 0 : i32
    return %c0_i32, %c0_i32_0 : i32, i32
  }
  func.func @transform_3(%arg0: i32) -> (i32, i32) {
    %c0_i32 = arith.constant 0 : i32
    %c0_i32_0 = arith.constant 0 : i32
    %c0_i32_1 = arith.constant 0 : i32
    return %c0_i32, %c0_i32_0 : i32, i32
  }
  func.func @transform_4(%arg0: i32) -> (i32, i32) {
    %c0_i32 = arith.constant 0 : i32
    %c0_i32_0 = arith.constant 0 : i32
    %c0_i32_1 = arith.constant 0 : i32
    return %c0_i32, %c0_i32_0 : i32, i32
  }
  func.func @transform_5(%arg0: i32) -> (i32, i32) {
    %c0_i32 = arith.constant 0 : i32
    %c0_i32_0 = arith.constant 0 : i32
    return %arg0, %c0_i32 : i32, i32
  }
}

</mosaic_0001>

<bundles_post_ra>
// kernel: tpu_custom_call.1
= control target key start
LH: loop header
LB: loop body
LE: loop exit
PB: predicated region body
PF: predicated region fallthrough
CT: control target
= control target key end

     0   :  { %10 = vsyncpa [#allocation3], 0  ;;  %s441_s0 = inlined_call_operand.hbm [shape: f32[8,20], index: 0, kind: input, shape index: {}]   ;;  %s442_s1 = inlined_call_operand.hbm [shape: f32[20,256], index: 1, kind: input, shape index: {}]   ;;  %s443_s2 = inlined_call_operand.hbm [shape: f32[1,256], index: 2, kind: input, shape index: {}]   ;;  %s444_s3 = inlined_call_operand.hbm [shape: f32[256,128], index: 3, kind: input, shape index: {}]   ;;  %s445_s4 = inlined_call_operand.vmem [shape: f32[1,128], index: 4, kind: input, shape index: {}]   ;;  %s446_s5 = inlined_call_operand.hbm [shape: f32[8,128], index: 5, kind: output, shape index: {}]  }
   0x1   :  { %11 = vsyncpa [#allocation6], 0 }
   0x2   :  { %12 = vsyncpa [#allocation9], 0  ;;  %s29_s20 = sshll.u32 %s442_s1, 4  ;;  %s30_s20 = int_to_ptr.hbm [resolvable:$true] %s29_s20 }
   0x3   :  { %13 = vsyncpa [#allocation4], 0  ;;  %s384_s21 = smov [#allocation5]   ;;  %s19_s25 = sshll.u32 %s441_s0, 4  ;;  %s20_s25 = int_to_ptr.hbm [resolvable:$true] %s19_s25 }
   0x4   :  { %s31_s22 = sshll.u32 %s384_s21, 4  ;;  %s385_s26 = smov 256   ;;  %s32_s22 = int_to_ptr.vmem [resolvable:$true] %s31_s22 }
   0x5   :  { %s386_s27 = smov 16   ;;  %s387_s28 = smov [#allocation2]  }
   0x6   :  { %37 = dma.hbm_to_vmem [thread:$0]  %s30_s20, 768, %s32_s22, [#allocation6], %s385_s26, %s385_s26, %s386_s27  }
   0x7   :  { %s21_s29 = sshll.u32 %s387_s28, 4  ;;  %s43_s7 = sshll.u32 %s443_s2, 4  ;;  %s22_s29 = int_to_ptr.vmem [resolvable:$true] %s21_s29  ;;  %s44_s7 = int_to_ptr.hbm [resolvable:$true] %s43_s7 }
   0x8   :  { %24 = dma.hbm_to_vmem [thread:$0]  %s20_s25, 128, %s22_s29, [#allocation3]  }
   0x9   :  { %s53_s9 = sshll.u32 %s444_s3, 4  ;;  %s388_s10 = smov [#allocation7]   ;;  %s54_s9 = int_to_ptr.hbm [resolvable:$true] %s53_s9 }
   0xa   :  { %s45_s11 = sshll.u32 %s388_s10, 4  ;;  %s389_s0 = smov [#allocation8]   ;;  %s46_s11 = int_to_ptr.vmem [resolvable:$true] %s45_s11 }
   0xb   :  { %48 = dma.hbm_to_vmem [thread:$0]  %s44_s7, 32, %s46_s11, [#allocation6]  }
   0xc   :  { %s55_s12 = sshll.u32 %s389_s0, 4  ;;  %s390_s13 = smov 128   ;;  %s56_s12 = int_to_ptr.vmem [resolvable:$true] %s55_s12 }
   0xd   :  { %s391_s14 = smov 8  }
   0xe   :  { %61 = dma.hbm_to_vmem [thread:$0]  %s54_s9, 4096, %s56_s12, [#allocation9], %s390_s13, %s390_s13, %s391_s14  }
   0xf   :  { %376 = dma.done.wait [#allocation3], 128  }
  0x10   :  { %377 = vsyncadd [#allocation3], 4294967168 }
  0x11   :  { %378 = dma.done.wait [#allocation6], 800  }
  0x12   :  { %379 = vsyncadd [#allocation6], 4294966496 }
  0x13   :  { %380 = dma.done.wait [#allocation9], 4096  }
  0x14   :  { %381 = vsyncadd [#allocation9], 4294963200  ;;  %vm97_vm0 = vcmask 1043456   ;;  %v85_v0 = vld [vmem:[#allocation5 + $0x20] sm:$0xf]  ;;  %v83_v1 = vld [vmem:[#allocation5 + $0x10] sm:$0xff] }
  0x15   :  { %v86_v2 = vld [vmem:[#allocation5 + $0x28] sm:$0xf]  ;;  %242 = vmatpush.msk.msra.mxu0 %vm97_vm0, %v85_v0  ;;  %v84_v3 = vld [vmem:[#allocation5 + $0x18] sm:$0xff]  ;;  %v81_v4 = vld [vmem:[#allocation5] sm:$0xff]  ;;  %vm93_vm1 = vcmask 162816   ;;  %s392_s15 = smov [#allocation10]  }
  0x16   :  { %244 = vmatpush.msk.msra.mxu1 %vm97_vm0, %v86_v2  ;;  %v82_v5 = vld [vmem:[#allocation5 + $0x8] sm:$0xff]  ;;  %v80_v7 = vld [vmem:[#allocation2] sm:$0xff]  ;;  %v87_v39 = vld [vmem:[#allocation7] sm:$0x3]  ;;  %s228_s16 = sshll.u32 %s392_s15, 4  ;;  %s230_s19 = sshll.u32 %s446_s5, 4  ;;  %s229_s16 = int_to_ptr.vmem [resolvable:$true] %s228_s16  ;;  %s231_s19 = int_to_ptr.hbm [resolvable:$true] %s230_s19 }
  0x17   :  { %v161_v6 = vld [vmem:[#allocation8 + $0x78] sm:$0xff]  ;;  %118 = vmatpush.msra.mxu0 %v83_v1  ;;  %v160_v9 = vld [vmem:[#allocation8 + $0x70] sm:$0xff]  ;;  %v159_v11 = vld [vmem:[#allocation8 + $0x68] sm:$0xff]  ;;  %v89_v40 = vperm.slane %v87_v39, 0  ;;  %v90_v41 = vperm.slane %v87_v39, 1 }
  0x18   :  { %138 = vmatpush.msra.mxu1 %v84_v3  ;;  %v177_v8 = vld [vmem:[#allocation8 + $0xf8] sm:$0xff]  ;;  %182 = vmatpush.msra.mxu2 %v161_v6  ;;  %v176_v10 = vld [vmem:[#allocation8 + $0xf0] sm:$0xff]  ;;  %v175_v12 = vld [vmem:[#allocation8 + $0xe8] sm:$0xff] }
  0x19   :  { %202 = vmatpush.msra.mxu3 %v177_v8  ;;  %119 = vmatpush.msra.mxu0 %v81_v4  ;;  %v158_v13 = vld [vmem:[#allocation8 + $0x60] sm:$0xff]  ;;  %v157_v15 = vld [vmem:[#allocation8 + $0x58] sm:$0xff]  ;;  %v156_v17 = vld [vmem:[#allocation8 + $0x50] sm:$0xff] }
  0x1a   :  { %139 = vmatpush.msra.mxu1 %v82_v5  ;;  %243 = vmatmul.msk.f32.vlgmr.msra.gmra.mxu0 %vm93_vm1, %v80_v7  ;;  %v174_v14 = vld [vmem:[#allocation8 + $0xe0] sm:$0xff]  ;;  %v173_v16 = vld [vmem:[#allocation8 + $0xd8] sm:$0xff]  ;;  %v172_v18 = vld [vmem:[#allocation8 + $0xd0] sm:$0xff] }
  0x1b   :  { %245 = vmatmul.msk.f32.vlgmr.msra.gmra.mxu1 %vm93_vm1, %v80_v7  ;;  %183 = vmatpush.msra.mxu2 %v160_v9  ;;  %v155_v19 = vld [vmem:[#allocation8 + $0x48] sm:$0xff]  ;;  %v154_v21 = vld [vmem:[#allocation8 + $0x40] sm:$0xff]  ;;  %v153_v23 = vld [vmem:[#allocation8 + $0x38] sm:$0xff] }
  0x1c   :  { %203 = vmatpush.msra.mxu3 %v176_v10  ;;  %v171_v20 = vld [vmem:[#allocation8 + $0xc8] sm:$0xff]  ;;  %v170_v22 = vld [vmem:[#allocation8 + $0xc0] sm:$0xff]  ;;  %v169_v24 = vld [vmem:[#allocation8 + $0xb8] sm:$0xff] }
  0x1d   :  { %184 = vmatpush.msra.mxu2 %v159_v11  ;;  %v152_v25 = vld [vmem:[#allocation8 + $0x30] sm:$0xff]  ;;  %v151_v27 = vld [vmem:[#allocation8 + $0x28] sm:$0xff]  ;;  %v150_v29 = vld [vmem:[#allocation8 + $0x20] sm:$0xff] }
  0x1e   :  { %204 = vmatpush.msra.mxu3 %v175_v12  ;;  %v168_v26 = vld [vmem:[#allocation8 + $0xb0] sm:$0xff]  ;;  %v167_v28 = vld [vmem:[#allocation8 + $0xa8] sm:$0xff]  ;;  %v166_v30 = vld [vmem:[#allocation8 + $0xa0] sm:$0xff] }
  0x1f   :  { %185 = vmatpush.msra.mxu2 %v158_v13  ;;  %v149_v31 = vld [vmem:[#allocation8 + $0x18] sm:$0xff]  ;;  %v148_v32 = vld [vmem:[#allocation8 + $0x10] sm:$0xff]  ;;  %v147_v34 = vld [vmem:[#allocation8 + $0x8] sm:$0xff] }
  0x20   :  { %205 = vmatpush.msra.mxu3 %v174_v14  ;;  %v165_v33 = vld [vmem:[#allocation8 + $0x98] sm:$0xff]  ;;  %v164_v35 = vld [vmem:[#allocation8 + $0x90] sm:$0xff]  ;;  %v146_v36 = vld [vmem:[#allocation8] sm:$0xff] }
  0x21   :  { %186 = vmatpush.msra.mxu2 %v157_v15  ;;  %v163_v37 = vld [vmem:[#allocation8 + $0x88] sm:$0xff]  ;;  %v162_v38 = vld [vmem:[#allocation8 + $0x80] sm:$0xff] }
  0x22   :  { %206 = vmatpush.msra.mxu3 %v173_v16  ;;  %v255_v48 = vld [vmem:[%s445_s4] ss:$0 sm:$0xff] }
  0x23   :  { %187 = vmatpush.msra.mxu2 %v156_v17 }
  0x24   :  { %207 = vmatpush.msra.mxu3 %v172_v18 }
  0x25   :  { %188 = vmatpush.msra.mxu2 %v155_v19 }
  0x26   :  { %208 = vmatpush.msra.mxu3 %v171_v20 }
  0x27   :  { %189 = vmatpush.msra.mxu2 %v154_v21 }
  0x28   :  { %209 = vmatpush.msra.mxu3 %v170_v22 }
  0x29   :  { %190 = vmatpush.msra.mxu2 %v153_v23 }
  0x2a   :  { %210 = vmatpush.msra.mxu3 %v169_v24 }
  0x2b   :  { %191 = vmatpush.msra.mxu2 %v152_v25 }
  0x2c   :  { %211 = vmatpush.msra.mxu3 %v168_v26 }
  0x2d   :  { %192 = vmatpush.msra.mxu2 %v151_v27 }
  0x2e   :  { %212 = vmatpush.msra.mxu3 %v167_v28 }
  0x2f   :  { %193 = vmatpush.msra.mxu2 %v150_v29 }
  0x30   :  { %213 = vmatpush.msra.mxu3 %v166_v30 }
  0x31   :  { %194 = vmatpush.msra.mxu2 %v149_v31 }
  0x32   :  { %214 = vmatpush.msra.mxu3 %v165_v33 }
  0x33   :  { %195 = vmatpush.msra.mxu2 %v148_v32 }
  0x34   :  { %215 = vmatpush.msra.mxu3 %v164_v35 }
  0x35   :  { %196 = vmatpush.msra.mxu2 %v147_v34 }
  0x36   :  { %216 = vmatpush.msra.mxu3 %v163_v37 }
  0x37   :  { %197 = vmatpush.msra.mxu2 %v146_v36 }
  0x38   :  { %217 = vmatpush.msra.mxu3 %v162_v38 }
  0x97   :  { %v121_v42 = vpop.f32.mrf.mxu0 }
  0x98   :  { %v141_v43 = vpop.f32.mrf.mxu1  ;;  %v122_v44 = vadd.f32 %v121_v42, %v89_v40 }
  0x99   :  { %v142_v45 = vadd.f32 %v141_v43, %v90_v41 }
  0x9a   :  { %v144_v46 = vmax.f32 %v122_v44, 0.0 }
  0x9b   :  { %v145_v47 = vmax.f32 %v142_v45, 0.0 }
  0x9c   :  { %198 = vmatmul.f32.vlgmr.msra.gmra.mxu2 %v144_v46 }
  0x9d   :  { %218 = vmatmul.f32.vlgmr.msra.gmra.mxu3 %v145_v47 }
 0x11f   :  { %v199_v49 = vpop.f32.mrf.mxu2 }
 0x120   :  { %v219_v50 = vpop.f32.mrf.mxu3  ;;  %v200_v51 = vadd.f32 %v255_v48, %v199_v49 }
 0x122   :  { %v220_v52 = vadd.f32 %v219_v50, %v200_v51 }
 0x124   :  { %222 = vst [vmem:[#allocation10] sm:$0xff] %v220_v52 }
 0x125   :  { %233 = dma.vmem_to_hbm [thread:$0]  %s229_s16, 128, %s231_s19, [#allocation4]  }
 0x126   :  { %382 = dma.done.wait [#allocation4], 128  }
 0x127   :  { %383 = vsyncadd [#allocation4], 4294967168 }
 0x128   :  { %238 = vsyncpa [#allocation3], 1 }
 0x129   :  { %239 = vsyncpa [#allocation6], 1 }
 0x12a   :  { %240 = vsyncpa [#allocation9], 1 }
 0x12b   :  { %241 = vsyncpa [#allocation4], 1 }

</bundles_post_ra>
